<compile_context>
chip_gen: v6e
topology: v6e:2x2x1
jax: 0.10.0
libtpu: 0.0.40
codegen_flags: <defaults>
</compile_context>

<pallas_src>
import functools
import math

import jax
import jax.numpy as jnp
from jax.experimental import pallas as pl
from jax.experimental.pallas import tpu as pltpu

_LANE = 128
_TILE_TARGET_BYTES = 8 * 1024 * 1024       # ~8 MiB/tile amortizes per-step overhead
_VMEM_LIMIT_BYTES = 48 * 1024 * 1024       # 2in+2out x 8 MiB + params; <64 MiB (v7x)
_SMALL_FALLBACK_BYTES = 2 * 1024 * 1024    # below this, plain XLA fuses better
_SPLIT_FOR_CORES_BYTES = 512 * 1024        # above this, force >=2 grid steps (v7x 2 TCs)


# ------------------------------ kernels ------------------------------------

def _film_kernel(x_ref, scale_ref, bias_ref, o_ref, *, use_sigmoid):
    # f32 compute (HBM-bound kernel -> upcast is free); params are already f32.
    y = x_ref[...].astype(jnp.float32) * scale_ref[...]
    y = y + bias_ref[...]
    if use_sigmoid:
        y = jax.nn.sigmoid(y)              # EUP slot -> free filler
    o_ref[...] = y.astype(o_ref.dtype)


def _film_kernel_nobias(x_ref, scale_ref, o_ref, *, use_sigmoid):
    y = x_ref[...].astype(jnp.float32) * scale_ref[...]
    if use_sigmoid:
        y = jax.nn.sigmoid(y)
    o_ref[...] = y.astype(o_ref.dtype)


# ------------------------------ layout helpers ------------------------------

def _lane_dense_layout(n_rows, d):
    """Pick a (M, L, rep) view of the flat (n_rows*d,) data.

    L is a multiple of 128 (lane-dense stores) and of d (so scale/bias tile
    cleanly into a resident (1, L) row). The caller guarantees n_rows*d is a
    multiple of lcm(d, 128) when d % 128 != 0 (tail rows are split off first).
    """
    if d % _LANE == 0:
        return n_rows, d, 1
    total = n_rows * d
    period = (d * _LANE) // math.gcd(d, _LANE)   # lcm(d, 128)
    if total % period != 0:
        return n_rows, d, 1                      # defensive; wrapper avoids this
    cap = max(period, 16 * _LANE)                # up to 2048 lanes per row
    best = period
    m = cap // period
    while m >= 1:
        cand = m * period
        if total % cand == 0:
            best = cand
            break
        m -= 1
    return total // best, best, best // d


def _pick_block_rows(m_rows, row_bytes, itemsize, target_bytes=_TILE_TARGET_BYTES):
    """Row tile sized for ~target_bytes, sublane-rounded, preferring an even
    number of grid steps (v7x: 2 TensorCores) with a full last block."""
    sub = 8 * max(1, 4 // max(1, itemsize))      # 8 f32, 16 bf16, 32 int8/fp8
    cap = max(sub, (max(1, target_bytes // max(1, row_bytes)) // sub) * sub)
    if cap >= m_rows:
        # Fits in one tile. If big enough, still split into 2 even steps so
        # both v7x TensorCores stream; tiny arrays stay single-step.
        if m_rows >= 2 * sub and m_rows * row_bytes > _SPLIT_FOR_CORES_BYTES:
            half = ((m_rows + 1) // 2 + sub - 1) // sub * sub
            return min(half, m_rows)
        return m_rows
    best_even = None
    best_exact = None
    r = cap
    tries = 0
    while r >= sub and tries < 4096:
        steps = -(-m_rows // r)
        exact = (m_rows % r == 0)
        even = (steps % 2 == 0)
        if even and exact:
            return r                             # ideal: even steps, full last block
        if even and best_even is None:
            best_even = r
        if exact and best_exact is None:
            best_exact = r
        r -= sub
        tries += 1
    if best_even is not None:
        return best_even
    if best_exact is not None:
        return best_exact
    return cap


# ------------------------------ wrapper -------------------------------------

def film(x, scale, bias=None, *, use_sigmoid=False, block_rows=None,
         use_pallas=None, donate_x=False):
    """FiLM forward. x: (..., D), scale: (D,), bias: (D,) or None."""
    orig_shape = x.shape
    D = orig_shape[-1]
    x2 = x.reshape(-1, D)
    N = x2.shape[0]
    itemsize = jnp.dtype(x.dtype).itemsize
    total = N * D

    # Mirror `.type(x.dtype)` from the PyTorch module.
    scale_c = scale.astype(x.dtype)
    bias_c = bias.astype(x.dtype) if bias is not None else None

    def _jnp_path(xm):
        y = xm.astype(jnp.float32) * scale_c.astype(jnp.float32)[None, :]
        if bias_c is not None:
            y = y + bias_c.astype(jnp.float32)[None, :]
        if use_sigmoid:
            y = jax.nn.sigmoid(y)
        return y.astype(x.dtype)

    if use_pallas is None:
        use_pallas = total * itemsize >= _SMALL_FALLBACK_BYTES
    if (not use_pallas) or total == 0 or D * itemsize > _TILE_TARGET_BYTES:
        # Tiny tensors (launch overhead dominates, blocks XLA fusion) or
        # pathologically wide rows: let XLA handle it.
        return _jnp_path(x2).reshape(orig_shape)

    # Split off a tiny ragged row-tail so the Pallas body stays lane-dense
    # (full-width vst) instead of masked partial stores on the whole array.
    tail_rows = 0
    if D % _LANE != 0:
        rep_rows = _LANE // math.gcd(D, _LANE)   # rows per lcm(D,128) period
        tail_rows = N % rep_rows                 # < 128 rows
    main_rows = N - tail_rows
    if main_rows == 0:
        return _jnp_path(x2).reshape(orig_shape)
    x_main = x2 if tail_rows == 0 else x2[:main_rows]

    # Lane-dense view + resident f32 parameter rows.
    M, L, rep = _lane_dense_layout(main_rows, D)
    x_view = x_main.reshape(M, L)
    scale_row = jnp.tile(scale_c, rep).reshape(1, L).astype(jnp.float32)
    bias_row = (jnp.tile(bias_c, rep).reshape(1, L).astype(jnp.float32)
                if bias_c is not None else None)

    if block_rows is None:
        block_rows = _pick_block_rows(M, L * itemsize, itemsize)
    block_rows = min(block_rows, M)
    grid = (pl.cdiv(M, block_rows),)

    x_spec = pl.BlockSpec((block_rows, L), lambda i: (i, 0))
    p_spec = pl.BlockSpec((1, L), lambda i: (0, 0))       # constant index -> resident
    out_spec = pl.BlockSpec((block_rows, L), lambda i: (i, 0))
    out_shape = jax.ShapeDtypeStruct((M, L), x.dtype)
    cparams = pltpu.CompilerParams(
        dimension_semantics=("parallel",),
        vmem_limit_bytes=_VMEM_LIMIT_BYTES,
    )

    if bias_row is not None:
        kernel = functools.partial(_film_kernel, use_sigmoid=use_sigmoid)
        in_specs = [x_spec, p_spec, p_spec]
        args = (x_view, scale_row, bias_row)
    else:
        kernel = functools.partial(_film_kernel_nobias, use_sigmoid=use_sigmoid)
        in_specs = [x_spec, p_spec]
        args = (x_view, scale_row)

    y_main = pl.pallas_call(
        kernel,
        out_shape=out_shape,
        grid_spec=pltpu.PrefetchScalarGridSpec(
            num_scalar_prefetch=0,
            grid=grid,
            in_specs=in_specs,
            out_specs=out_spec,
        ),
        compiler_params=cparams,
        input_output_aliases=({0: 0} if donate_x else {}),
    )(*args)

    y_main = y_main.reshape(main_rows, D)
    if tail_rows:
        y_tail = _jnp_path(x2[main_rows:])
        y2 = jnp.concatenate([y_main, y_tail], axis=0)
    else:
        y2 = y_main
    return y2.reshape(orig_shape)


# ------------------------------ demo / checks --------------------------------

def _ref(x, scale, bias, use_sigmoid):
    s = scale.astype(x.dtype)[None, :].astype(jnp.float32)
    y = x.astype(jnp.float32) * s
    if bias is not None:
        y = y + bias.astype(x.dtype)[None, :].astype(jnp.float32)
    if use_sigmoid:
        y = jax.nn.sigmoid(y)
    return y.astype(x.dtype)


if __name__ == "__main__":
    key = jax.random.PRNGKey(0)
    kx, kp = jax.random.split(key)

    # Small shapes matching the module's canonical use: batch=8, hidden=32.
    N, D = 8, 32
    x = jax.random.normal(kx, (N, D), dtype=jnp.float32)
    scale = jnp.ones((D,), dtype=jnp.float32)   # FiLM.__init__: ones
    bias = jnp.zeros((D,), dtype=jnp.float32)   # FiLM.__init__: zeros

    # 1) bias, no sigmoid — Pallas path forced (D=32 -> lane-dense retile).
    y = jax.block_until_ready(film(x, scale, bias, use_sigmoid=False, use_pallas=True))
    assert jnp.allclose(y, _ref(x, scale, bias, False), atol=1e-6), "mismatch (bias)"

    # 2) bias + sigmoid.
    y = jax.block_until_ready(film(x, scale, bias, use_sigmoid=True, use_pallas=True))
    assert jnp.allclose(y, _ref(x, scale, bias, True), atol=1e-6), "mismatch (sigmoid)"

    # 3) no bias.
    y = jax.block_until_ready(film(x, scale, None, use_sigmoid=False, use_pallas=True))
    assert jnp.allclose(y, _ref(x, scale, None, False), atol=1e-6), "mismatch (no bias)"

    # 4) D multiple of 128: multi-step even grid (2-TC split heuristic).
    k1, k2, k3 = jax.random.split(kp, 3)
    x2 = jax.random.normal(k1, (1024, 256), dtype=jnp.float32)
    s2 = jax.random.normal(k2, (256,), dtype=jnp.float32)
    b2 = jax.random.normal(k3, (256,), dtype=jnp.float32)
    y2 = jax.block_until_ready(film(x2, s2, b2, use_sigmoid=True, use_pallas=True))
    assert jnp.allclose(y2, _ref(x2, s2, b2, True), atol=1e-5, rtol=1e-5), "mismatch (256)"

    # 5) small D, large N: lane-dense retile.
    x3 = jax.random.normal(k1, (8192, 32), dtype=jnp.float32)
    s3 = jax.random.normal(k2, (32,), dtype=jnp.float32)
    b3 = jax.random.normal(k3, (32,), dtype=jnp.float32)
    y3 = jax.block_until_ready(film(x3, s3, b3, use_sigmoid=False, use_pallas=True))
    assert jnp.allclose(y3, _ref(x3, s3, b3, False), atol=1e-5, rtol=1e-5), "mismatch (8192x32)"

    # 6) ragged row count (N not multiple of the retile period): bulk stays
    #    lane-dense in Pallas, tiny 2-row tail goes through the XLA path.
    x5 = jax.random.normal(k1, (1030, 32), dtype=jnp.float32)
    y5 = jax.block_until_ready(film(x5, s3, b3, use_sigmoid=True, use_pallas=True))
    assert jnp.allclose(y5, _ref(x5, s3, b3, True), atol=1e-5, rtol=1e-5), "mismatch (ragged)"

    # 7) auto dispatch for tiny inputs (jnp fallback) still matches.
    y6 = jax.block_until_ready(film(x, scale, bias, use_sigmoid=True))
    assert jnp.allclose(y6, _ref(x, scale, bias, True), atol=1e-6), "mismatch (fallback)"

    # 8) bf16 input: sublane=16 block rounding, f32 compute in-kernel.
    xb = x3.astype(jnp.bfloat16)
    yb = jax.block_until_ready(film(xb, s3, b3, use_sigmoid=True, use_pallas=True))
    assert jnp.allclose(yb.astype(jnp.float32),
                        _ref(xb, s3, b3, True).astype(jnp.float32),
                        atol=2e-2, rtol=2e-2), "mismatch (bf16)"

    # 9) donated input buffer is aliased to the output (no extra HBM alloc).
    film_donated = jax.jit(
        functools.partial(film, use_sigmoid=False, use_pallas=True, donate_x=True),
        donate_argnums=(0,))
    x_ref_copy = _ref(x3, s3, b3, False)
    xd = x3 + 0.0                               # fresh donatable buffer
    yd = jax.block_until_ready(film_donated(xd, s3, b3))
    assert jnp.allclose(yd, x_ref_copy, atol=1e-5, rtol=1e-5), "mismatch (donated)"

    print("KERNEL_OK")
</pallas_src>

<mosaic_0001>
module attributes {stable_mosaic.version = 11 : i64} {
  func.func @_film_kernel(%arg0: i32, %arg1: memref<1x256xf32, #tpu.memory_space<vmem>>, %arg2: memref<1x256xf32, #tpu.memory_space<vmem>>, %arg3: memref<1x256xf32, #tpu.memory_space<vmem>>, %arg4: memref<1x256xf32, #tpu.memory_space<vmem>>) attributes {dimension_semantics = [#tpu.dimension_semantics<parallel>], iteration_bounds = array<i64: 1>, scalar_prefetch = 0 : i64, scratch_operands = 0 : i64, tpu.core_type = #tpu.core_type<tc>, window_params = [{transform_indices = @transform_0, window_bounds = array<i64: 1, 256>}, {pipeline_mode = #tpu.pipeline_mode<synchronous>, transform_indices = @transform_1, window_bounds = array<i64: 1, 256>}, {pipeline_mode = #tpu.pipeline_mode<synchronous>, transform_indices = @transform_2, window_bounds = array<i64: 1, 256>}, {transform_indices = @transform_3, window_bounds = array<i64: 1, 256>}]} {
    %c0 = arith.constant 0 : index
    %c0_0 = arith.constant 0 : index
    %0 = vector.load %arg1[%c0, %c0_0] : memref<1x256xf32, #tpu.memory_space<vmem>>, vector<1x256xf32>
    %c0_1 = arith.constant 0 : index
    %c0_2 = arith.constant 0 : index
    %1 = vector.load %arg2[%c0_1, %c0_2] : memref<1x256xf32, #tpu.memory_space<vmem>>, vector<1x256xf32>
    %2 = arith.mulf %0, %1 : vector<1x256xf32>
    %c0_3 = arith.constant 0 : index
    %c0_4 = arith.constant 0 : index
    %3 = vector.load %arg3[%c0_3, %c0_4] : memref<1x256xf32, #tpu.memory_space<vmem>>, vector<1x256xf32>
    %4 = arith.addf %2, %3 : vector<1x256xf32>
    %c0_5 = arith.constant 0 : index
    %c0_6 = arith.constant 0 : index
    %5 = vector.load %arg4[%c0_5, %c0_6] : memref<1x256xf32, #tpu.memory_space<vmem>>, vector<1x256xf32>
    tpu.vector_store %arg4[%c0_5, %c0_6], %4 {strides = array<i32>} : memref<1x256xf32, #tpu.memory_space<vmem>>, vector<1x256xf32>,
    return
  }
  func.func @transform_0(%arg0: i32) -> (i32, i32) {
    %c0_i32 = arith.constant 0 : i32
    %c0_i32_0 = arith.constant 0 : i32
    return %arg0, %c0_i32 : i32, i32
  }
  func.func @transform_1(%arg0: i32) -> (i32, i32) {
    %c0_i32 = arith.constant 0 : i32
    %c0_i32_0 = arith.constant 0 : i32
    %c0_i32_1 = arith.constant 0 : i32
    return %c0_i32, %c0_i32_0 : i32, i32
  }
  func.func @transform_2(%arg0: i32) -> (i32, i32) {
    %c0_i32 = arith.constant 0 : i32
    %c0_i32_0 = arith.constant 0 : i32
    %c0_i32_1 = arith.constant 0 : i32
    return %c0_i32, %c0_i32_0 : i32, i32
  }
  func.func @transform_3(%arg0: i32) -> (i32, i32) {
    %c0_i32 = arith.constant 0 : i32
    %c0_i32_0 = arith.constant 0 : i32
    return %arg0, %c0_i32 : i32, i32
  }
}

</mosaic_0001>

<bundles_post_ra>
// kernel: tpu_custom_call.1
= control target key start
LH: loop header
LB: loop body
LE: loop exit
PB: predicated region body
PF: predicated region fallthrough
CT: control target
= control target key end

     0   :  { %8 = vsyncpa [#allocation3], 0  ;;  %s169_s0 = inlined_call_operand.hbm [shape: f32[1,256], index: 0, kind: input, shape index: {}]   ;;  %s170_s1 = inlined_call_operand.hbm [shape: f32[1,256], index: 1, kind: input, shape index: {}]   ;;  %s171_s2 = inlined_call_operand.vmem [shape: f32[1,256], index: 2, kind: input, shape index: {}]   ;;  %s172_s3 = inlined_call_operand.hbm [shape: f32[1,256], index: 3, kind: output, shape index: {}]  }
   0x1   :  { %9 = vsyncpa [#allocation6], 0 }
   0x2   :  { %10 = vsyncpa [#allocation4], 0  ;;  %s134_s12 = smov [#allocation2]   ;;  %s135_s14 = smov [#allocation5]  }
   0x3   :  { %s17_s13 = sshll.u32 %s134_s12, 4  ;;  %s27_s15 = sshll.u32 %s135_s14, 4  ;;  %s18_s13 = int_to_ptr.vmem [resolvable:$true] %s17_s13  ;;  %s28_s15 = int_to_ptr.vmem [resolvable:$true] %s27_s15 }
   0x4   :  { %s76_s16 = scalar_lea.vmem %s18_s13, 32  ;;  %p81_p1 = scmp.lt.s32.totalorder %s18_s13, %s18_s13 }
   0x5   :  { %p77_p0 = scmp.ne.s32.totalorder %s18_s13, %s76_s16  ;;  %p82_p2 = scmp.lt.s32.totalorder %s76_s16, %s76_s16 }
   0x7   :  { %p83_p3 = por %p82_p2, %p81_p1 }
   0x9   :  { %p84_p4 = pnand %p83_p3, %p77_p0 }
   0xb   :  { %87 = shalt.err (!%p84_p4)
}
   0xc   :  { %20 = dma.hbm_to_vmem [thread:$0]  %s169_s0, 32, %s18_s13, [#allocation3]  }
   0xd   :  { %s96_s19 = scalar_lea.vmem %s28_s15, 32  ;;  %p101_p6 = scmp.lt.s32.totalorder %s28_s15, %s28_s15 }
   0xe   :  { %p97_p5 = scmp.ne.s32.totalorder %s28_s15, %s96_s19  ;;  %p102_p7 = scmp.lt.s32.totalorder %s96_s19, %s96_s19 }
  0x10   :  { %p103_p8 = por %p102_p7, %p101_p6 }
  0x12   :  { %p104_p9 = pnand %p103_p8, %p97_p5 }
  0x14   :  { %107 = shalt.err (!%p104_p9)
}
  0x15   :  { %30 = dma.hbm_to_vmem [thread:$0]  %s170_s1, 32, %s28_s15, [#allocation6]  }
  0x16   :  { %128 = dma.done.wait [#allocation3], 32  }
  0x17   :  { %129 = vsyncadd [#allocation3], 4294967264 }
  0x18   :  { %130 = dma.done.wait [#allocation6], 32  }
  0x19   :  { %131 = vsyncadd [#allocation6], 4294967264  ;;  %v44_v0 = vlaneseq  ;;  %s136_s22 = smov [#allocation7]   ;;  %v39_v1 = vld [vmem:[#allocation2] sm:$0x3] }
  0x1a   :  { %s55_s23 = sshll.u32 %s136_s22, 4  ;;  %v40_v2 = vld [vmem:[#allocation5] sm:$0x3]  ;;  %v42_v3 = vld [vmem:[%s171_s2] sm:$0x3]  ;;  %s56_s23 = int_to_ptr.vmem [resolvable:$true] %s55_s23 }
  0x1b   :  { %v41_v4 = vmul.f32 %v40_v2, %v39_v1  ;;  %vm46_vm0 = vcmp.lt.s32.totalorder %v44_v0, 256  ;;  %s108_s25 = scalar_lea.vmem %s56_s23, 32  ;;  %p113_p11 = scmp.lt.s32.totalorder %s56_s23, %s56_s23 }
  0x1c   :  { %p109_p10 = scmp.ne.s32.totalorder %s56_s23, %s108_s25  ;;  %p114_p12 = scmp.lt.s32.totalorder %s108_s25, %s108_s25 }
  0x1d   :  { %v43_v5 = vadd.f32 %v42_v3, %v41_v4 }
  0x1e   :  { %p115_p13 = por %p114_p12, %p113_p11 }
  0x1f   :  { %48 = vst.msk [vmem:[#allocation7] sm:$0x3] %vm46_vm0, %v43_v5 }
  0x20   :  { %p116_p0 = pnand %p115_p13, %p109_p10 }
  0x22   :  { %119 = shalt.err (!%p116_p0)
}
  0x23   :  { %58 = dma.vmem_to_hbm [thread:$0]  %s56_s23, 32, %s172_s3, [#allocation4]  }
  0x24   :  { %132 = dma.done.wait [#allocation4], 32  }
  0x25   :  { %133 = vsyncadd [#allocation4], 4294967264 }
  0x26   :  { %62 = vsyncpa [#allocation3], 1 }
  0x27   :  { %63 = vsyncpa [#allocation6], 1 }
  0x28   :  { %64 = vsyncpa [#allocation4], 1 }

</bundles_post_ra>
